<compile_context>
chip_gen: v7x
topology: tpu7x:2x2x1
jax: 0.10.0
libtpu: 0.0.40
codegen_flags: <defaults>
</compile_context>

<pallas_src>
import functools

import jax
import jax.numpy as jnp
from jax.experimental import pallas as pl
from jax.experimental.pallas import tpu as pltpu

# Explicit scoped-VMEM budget, sized with v7x (64 MiB physical) in mind.
VMEM_LIMIT = 32 * 1024 * 1024


def _round_up(x, m):
    return ((x + m - 1) // m) * m


# ---------------------------------------------------------------------------
# Kernels
# ---------------------------------------------------------------------------
def transform_kernel(t_ref, pts_ref, pt3_ref, ptt_ref):
    # t_ref: (1,3,4)  pts_ref: (1,3,N)  outputs: (1,3,N) each.
    # pt3 = R p + t, pt_trans = R pt3 + t  (T applied twice, as in the model:
    # the encoder's returned points are re-transformed before projection).
    t = t_ref[0]                                  # (3, 4)
    R = t[:, 0:3]                                 # (3, 3)
    tr = t[:, 3:4]                                # (3, 1)
    p = pts_ref[0]                                # (3, N)
    pt3 = jnp.dot(R, p, preferred_element_type=jnp.float32) + tr
    pt3_ref[0] = pt3.astype(pt3_ref.dtype)
    ptt = jnp.dot(R, pt3, preferred_element_type=jnp.float32) + tr
    ptt_ref[0] = ptt.astype(ptt_ref.dtype)


def mlp_kernel(x_ref, w_ref, b_ref, out_ref, *, act):
    # x_ref: (TM, Cin)  w_ref: (Cin, Cout)  b_ref: (1, Cout)  out: (TM, Cout)
    y = jnp.dot(x_ref[...], w_ref[...], preferred_element_type=jnp.float32)
    y = y + b_ref[...]
    if act == "relu":
        y = jnp.maximum(y, 0.0)
    elif act == "sigmoid":
        y = jax.nn.sigmoid(y)
    out_ref[...] = y.astype(out_ref.dtype)


def project_kernel(cam_ref, pts_ref, feat_ref, out_ref, pix_ref, *, H, W, THW, TN):
    # cam_ref:  (B, 4) in SMEM  [fx, fy, cx, cy]
    # pts_ref:  (1, 3, TN)  camera-frame points tile
    # feat_ref: (1, TN, C)  per-point feature tile
    # out_ref:  (1, THW, C) accumulator, resident across the N grid axis
    # pix_ref:  (THW, TN) int32 VMEM scratch (pixel-index iota, built per HW tile)
    b = pl.program_id(0)
    hw_t = pl.program_id(1)
    n_t = pl.program_id(2)

    @pl.when(n_t == 0)
    def _():
        out_ref[...] = jnp.zeros_like(out_ref)
        pix_ref[...] = (
            jax.lax.broadcasted_iota(jnp.int32, (THW, TN), 0) + hw_t * THW)

    pts = pts_ref[0]                              # (3, TN)
    x = pts[0:1, :]
    y = pts[1:2, :]
    z = pts[2:3, :]
    fx = cam_ref[b, 0]
    fy = cam_ref[b, 1]
    cx = cam_ref[b, 2]
    cy = cam_ref[b, 3]

    inv_z = pl.reciprocal(jnp.where(z > 0, z, 1.0), approx=True)   # EUP, frees VALU
    u = jnp.floor(fx * x * inv_z + cx).astype(jnp.int32)           # (1, TN)
    v = jnp.floor(fy * y * inv_z + cy).astype(jnp.int32)           # (1, TN)
    valid = (z > 0) & (u >= 0) & (u < W) & (v >= 0) & (v < H)
    idx = jnp.where(valid, v * W + u, -1)                          # (1, TN)

    # One-hot scatter as an MXU matmul; bf16 inputs, f32 accumulation.
    onehot = (pix_ref[...] == idx).astype(jnp.bfloat16)            # (THW, TN)
    contrib = jnp.dot(onehot, feat_ref[0].astype(jnp.bfloat16),
                      preferred_element_type=jnp.float32)          # (THW, C)
    out_ref[0] += contrib.astype(out_ref.dtype)


def conv_pair_kernel(xpad_ref, w1_ref, b1_ref, w2_ref, b2_ref, out_ref,
                     hpad_ref, *, H, W, act2):
    # Fused (3x3 conv -> relu -> 3x3 conv -> act2), 'same' padding.
    # xpad_ref: (1, H+2, W+2, Cin)  zero-padded input image tile
    # w1_ref: (9, Cin, Chid)  b1_ref: (1, Chid)
    # w2_ref: (9, Chid, Cout) b2_ref: (1, Cout)
    # out_ref: (1, H, W, Cout)
    # hpad_ref: (H+2, W+2, Chid) VMEM scratch for the zero-padded hidden map.
    cin = xpad_ref.shape[-1]
    chid = w1_ref.shape[-1]
    cout = w2_ref.shape[-1]
    taps = [(dy, dx) for dy in range(3) for dx in range(3)]

    # conv1: in-kernel im2col as 9 tap matmuls (no HBM im2col).
    h = jnp.zeros((H * W, chid), jnp.float32) + b1_ref[...]
    for k, (dy, dx) in enumerate(taps):
        tap = xpad_ref[0, dy:dy + H, dx:dx + W, :].reshape(H * W, cin)
        h = h + jnp.dot(tap, w1_ref[k], preferred_element_type=jnp.float32)
    h = jnp.maximum(h, 0.0)

    # Hidden activation never leaves VMEM; zero-pad it for the second conv.
    hpad_ref[...] = jnp.zeros_like(hpad_ref)
    hpad_ref[1:H + 1, 1:W + 1, :] = h.reshape(H, W, chid)

    # conv2
    y = jnp.zeros((H * W, cout), jnp.float32) + b2_ref[...]
    for k, (dy, dx) in enumerate(taps):
        tap = hpad_ref[dy:dy + H, dx:dx + W, :].reshape(H * W, chid)
        y = y + jnp.dot(tap, w2_ref[k], preferred_element_type=jnp.float32)
    if act2 == "sigmoid":
        y = jax.nn.sigmoid(y)
    elif act2 == "relu":
        y = jnp.maximum(y, 0.0)
    out_ref[0] = y.reshape(H, W, cout).astype(out_ref.dtype)


# ---------------------------------------------------------------------------
# Pallas wrappers
# ---------------------------------------------------------------------------
def pallas_transform2(pts, T):
    """pts (B,3,N), T (B,4,4) -> (pt3, pt_trans), each (B,3,N)."""
    B, _, N = pts.shape
    T34 = T[:, :3, :]
    return pl.pallas_call(
        transform_kernel,
        out_shape=(jax.ShapeDtypeStruct((B, 3, N), pts.dtype),
                   jax.ShapeDtypeStruct((B, 3, N), pts.dtype)),
        grid=(B,),
        in_specs=[
            pl.BlockSpec((1, 3, 4), lambda b: (b, 0, 0)),
            pl.BlockSpec((1, 3, N), lambda b: (b, 0, 0)),
        ],
        out_specs=(
            pl.BlockSpec((1, 3, N), lambda b: (b, 0, 0)),
            pl.BlockSpec((1, 3, N), lambda b: (b, 0, 0)),
        ),
        compiler_params=pltpu.CompilerParams(
            dimension_semantics=("parallel",), vmem_limit_bytes=VMEM_LIMIT),
    )(T34, pts)


def pallas_matmul_bias(x, w, b, act):
    """x (B,M,Cin) @ w (Cin,Cout) + b with activation.

    Batch is flattened into the row dimension and row-tiled; weights/bias are
    grid-constant blocks (avoids the one-giant-block-per-batch pattern)."""
    B, M, Cin = x.shape
    Cout = w.shape[1]
    rows = B * M
    TM = 512 if rows >= 512 else _round_up(rows, 8)
    rows_p = _round_up(rows, TM)
    xf = x.reshape(rows, Cin)
    if rows_p != rows:
        xf = jnp.concatenate(
            [xf, jnp.zeros((rows_p - rows, Cin), x.dtype)], axis=0)
    y = pl.pallas_call(
        functools.partial(mlp_kernel, act=act),
        out_shape=jax.ShapeDtypeStruct((rows_p, Cout), x.dtype),
        grid=(rows_p // TM,),
        in_specs=[
            pl.BlockSpec((TM, Cin), lambda i: (i, 0)),
            pl.BlockSpec((Cin, Cout), lambda i: (0, 0)),
            pl.BlockSpec((1, Cout), lambda i: (0, 0)),
        ],
        out_specs=pl.BlockSpec((TM, Cout), lambda i: (i, 0)),
        compiler_params=pltpu.CompilerParams(
            dimension_semantics=("parallel",), vmem_limit_bytes=VMEM_LIMIT),
    )(xf, w, b.reshape(1, Cout))
    return y[:rows].reshape(B, M, Cout)


def pallas_project(pts, feat, cam, H, W):
    """geo.projectPointFeature2Image: pts (B,3,N) camera-frame points,
    feat (B,N,C), cam (B,4)=[fx,fy,cx,cy] -> (B,H,W,C).  Collisions summed."""
    B, _, N = pts.shape
    C = feat.shape[-1]
    HW = H * W
    assert HW % 8 == 0

    # Pad N to a lane-friendly multiple of the N tile; padded points get z=-1
    # (invalid -> contribute nothing), padded features are zero.
    Np = _round_up(N, 128)
    TN = Np if Np <= 512 else 512
    Np = _round_up(Np, TN)
    if Np != N:
        pad = Np - N
        pad_pts = jnp.concatenate(
            [jnp.zeros((B, 2, pad), pts.dtype), -jnp.ones((B, 1, pad), pts.dtype)],
            axis=1)
        pts = jnp.concatenate([pts, pad_pts], axis=2)
        feat = jnp.concatenate([feat, jnp.zeros((B, pad, C), feat.dtype)], axis=1)

    THW = HW if HW <= 2048 else 2048
    assert HW % THW == 0

    img = pl.pallas_call(
        functools.partial(project_kernel, H=H, W=W, THW=THW, TN=TN),
        out_shape=jax.ShapeDtypeStruct((B, HW, C), jnp.float32),
        grid=(B, HW // THW, Np // TN),
        in_specs=[
            pl.BlockSpec(memory_space=pltpu.MemorySpace.SMEM),        # cam scalars
            pl.BlockSpec((1, 3, TN), lambda b, h, n: (b, 0, n)),
            pl.BlockSpec((1, TN, C), lambda b, h, n: (b, n, 0)),
        ],
        out_specs=pl.BlockSpec((1, THW, C), lambda b, h, n: (b, h, 0)),
        scratch_shapes=[pltpu.VMEM((THW, TN), jnp.int32)],
        compiler_params=pltpu.CompilerParams(
            dimension_semantics=("parallel", "parallel", "arbitrary"),
            vmem_limit_bytes=VMEM_LIMIT),
    )(cam, pts, feat)
    return img.reshape(B, H, W, C)


def pallas_conv_pair(x, w1, b1, w2, b2, act2):
    """Fused (3x3 conv, relu) -> (3x3 conv, act2), 'same' padding, NHWC."""
    B, H, W, Cin = x.shape
    Chid = w1.shape[-1]
    Cout = w2.shape[-1]
    xpad = jnp.pad(x, ((0, 0), (1, 1), (1, 1), (0, 0)))
    w1m = w1.reshape(9, Cin, Chid)
    w2m = w2.reshape(9, Chid, Cout)
    return pl.pallas_call(
        functools.partial(conv_pair_kernel, H=H, W=W, act2=act2),
        out_shape=jax.ShapeDtypeStruct((B, H, W, Cout), x.dtype),
        grid=(B,),
        in_specs=[
            pl.BlockSpec((1, H + 2, W + 2, Cin), lambda b: (b, 0, 0, 0)),
            pl.BlockSpec((9, Cin, Chid), lambda b: (0, 0, 0)),
            pl.BlockSpec((1, Chid), lambda b: (0, 0)),
            pl.BlockSpec((9, Chid, Cout), lambda b: (0, 0, 0)),
            pl.BlockSpec((1, Cout), lambda b: (0, 0)),
        ],
        out_specs=pl.BlockSpec((1, H, W, Cout), lambda b: (b, 0, 0, 0)),
        scratch_shapes=[pltpu.VMEM((H + 2, W + 2, Chid), jnp.float32)],
        compiler_params=pltpu.CompilerParams(
            dimension_semantics=("parallel",), vmem_limit_bytes=VMEM_LIMIT),
    )(xpad, w1m, b1.reshape(1, Chid), w2m, b2.reshape(1, Cout))


# ---------------------------------------------------------------------------
# Point2ImageRefine.forward
# ---------------------------------------------------------------------------
def point2image_refine_forward(params, ptc, T, K, image_size):
    """ptc (B,6,N) [xyz+rgb], T (B,4,4), K (B,3,3).
    Returns ([coarse_image, refined_image] in NCHW, image_tensor list in NCHW)."""
    H, W = image_size
    B, _, N = ptc.shape
    rgb_pts = jnp.transpose(ptc[:, 3:, :], (0, 2, 1))               # (B, N, 3)

    # One launch: pt3 = T@p and pt_trans = T@pt3 (model composes T twice).
    pt3, pt_trans = pallas_transform2(ptc[:, :3, :], T)             # (B, 3, N) each

    # PtEncoder stand-in: shared point MLP, single scale.
    enc_in = jnp.concatenate(
        [jnp.transpose(pt3, (0, 2, 1)), rgb_pts], axis=-1)          # (B, N, 6)
    feat = pallas_matmul_bias(enc_in, params["enc_w"], params["enc_b"], "relu")
    F = feat.shape[-1]
    assert F >= 4

    # Single fused projection launch: the feature projection (points pt_trans)
    # and the rgb + z/5 "addition" projection (points pt3) are stacked along
    # the batch axis; addition features are channel-padded to F.
    z_pts = jnp.transpose(pt3[:, 2:3, :], (0, 2, 1))                # (B, N, 1)
    add_feat = jnp.concatenate([rgb_pts, z_pts / 5.0], axis=-1)     # (B, N, 4)
    add_feat = jnp.pad(add_feat, ((0, 0), (0, 0), (0, F - 4)))      # (B, N, F)
    proj_pts = jnp.concatenate([pt_trans, pt3], axis=0)             # (2B, 3, N)
    proj_feat = jnp.concatenate([feat, add_feat], axis=0)           # (2B, N, F)
    cam = jnp.stack([K[:, 0, 0], K[:, 1, 1], K[:, 0, 2], K[:, 1, 2]], axis=-1)
    cam2 = jnp.concatenate([cam, cam], axis=0)                      # (2B, 4)
    proj = pallas_project(proj_pts, proj_feat, cam2, H, W)          # (2B, H, W, F)
    feat_img = proj[:B]                                             # (B, H, W, F)
    additions = proj[B:, :, :, :4]                                  # rgb(3) + z/5(1)
    img_tensor = [feat_img]

    # ImgDecoder stand-in: fused 3x3 conv pair -> 3-channel coarse image.
    coarse = pallas_conv_pair(feat_img, params["dec_w1"], params["dec_b1"],
                              params["dec_w2"], params["dec_b2"], "sigmoid")

    # Refine input: [coarse.detach(), addition_rgb, addition_z]
    for_refine = jnp.concatenate(
        [jax.lax.stop_gradient(coarse), additions], axis=-1)        # (B, H, W, 7)

    # RefineGenerator(7, 3) stand-in: fused 3x3 conv pair.
    output = pallas_conv_pair(for_refine, params["ref_w1"], params["ref_b1"],
                              params["ref_w2"], params["ref_b2"], "sigmoid")

    to_nchw = lambda t: jnp.transpose(t, (0, 3, 1, 2))
    return [to_nchw(coarse), to_nchw(output)], [to_nchw(t) for t in img_tensor]


# ---------------------------------------------------------------------------
# Deterministic parameter construction
# ---------------------------------------------------------------------------
def init_params(key, n_feat=8, hid=16):
    ks = jax.random.split(key, 5)
    w = lambda k, shape, s: (s * jax.random.normal(k, shape)).astype(jnp.float32)
    return {
        "enc_w": w(ks[0], (6, n_feat), 0.5),
        "enc_b": jnp.zeros((n_feat,), jnp.float32),
        "dec_w1": w(ks[1], (3, 3, n_feat, hid), 0.2),
        "dec_b1": jnp.zeros((hid,), jnp.float32),
        "dec_w2": w(ks[2], (3, 3, hid, 3), 0.2),
        "dec_b2": jnp.zeros((3,), jnp.float32),
        "ref_w1": w(ks[3], (3, 3, 7, hid), 0.2),
        "ref_b1": jnp.zeros((hid,), jnp.float32),
        "ref_w2": w(ks[4], (3, 3, hid, 3), 0.2),
        "ref_b2": jnp.zeros((3,), jnp.float32),
    }


if __name__ == "__main__":
    B, N, H, W = 2, 64, 16, 16
    k_param, k_xy, k_z, k_rgb = jax.random.split(jax.random.PRNGKey(0), 4)
    params = init_params(k_param)

    xy = jax.random.uniform(k_xy, (B, 2, N), minval=-1.0, maxval=1.0)
    z = jax.random.uniform(k_z, (B, 1, N), minval=2.0, maxval=4.0)
    rgb = jax.random.uniform(k_rgb, (B, 3, N), minval=0.0, maxval=1.0)
    ptc = jnp.concatenate([xy, z, rgb], axis=1).astype(jnp.float32)   # (B, 6, N)

    T = jnp.tile(jnp.eye(4, dtype=jnp.float32)[None], (B, 1, 1))      # (B, 4, 4)
    K = jnp.tile(
        jnp.array([[float(W), 0.0, W / 2.0],
                   [0.0, float(H), H / 2.0],
                   [0.0, 0.0, 1.0]], dtype=jnp.float32)[None],
        (B, 1, 1),
    )                                                                  # (B, 3, 3)

    (coarse_nchw, refined_nchw), img_tensor = point2image_refine_forward(
        params, ptc, T, K, (H, W)
    )
    jax.block_until_ready((coarse_nchw, refined_nchw, img_tensor))

    assert coarse_nchw.shape == (B, 3, H, W)
    assert refined_nchw.shape == (B, 3, H, W)
    assert img_tensor[0].shape[0] == B
    print("KERNEL_OK")
</pallas_src>

<mosaic_0001>
module attributes {stable_mosaic.version = 11 : i64} {
  func.func @transform_kernel(%arg0: i32, %arg1: memref<1x3x4xf32, #tpu.memory_space<vmem>>, %arg2: memref<1x3x64xf32, #tpu.memory_space<vmem>>, %arg3: memref<1x3x64xf32, #tpu.memory_space<vmem>>, %arg4: memref<1x3x64xf32, #tpu.memory_space<vmem>>) attributes {dimension_semantics = [#tpu.dimension_semantics<parallel>], iteration_bounds = array<i64: 2>, scalar_prefetch = 0 : i64, scratch_operands = 0 : i64, tpu.core_type = #tpu.core_type<tc>, window_params = [{transform_indices = @transform_0, window_bounds = array<i64: 1, 3, 4>}, {transform_indices = @transform_1, window_bounds = array<i64: 1, 3, 64>}, {transform_indices = @transform_2, window_bounds = array<i64: 1, 3, 64>}, {transform_indices = @transform_3, window_bounds = array<i64: 1, 3, 64>}]} {
    %c0 = arith.constant 0 : index
    %c0_0 = arith.constant 0 : index
    %c0_1 = arith.constant 0 : index
    %0 = vector.load %arg1[%c0, %c0_0, %c0_1] : memref<1x3x4xf32, #tpu.memory_space<vmem>>, vector<1x3x4xf32>
    %1 = vector.shape_cast %0 : vector<1x3x4xf32> to vector<3x4xf32>
    %2 = vector.extract_strided_slice %1 {offsets = [0, 0], sizes = [3, 3], strides = [1, 1]} : vector<3x4xf32> to vector<3x3xf32>
    %3 = vector.extract_strided_slice %1 {offsets = [0, 3], sizes = [3, 1], strides = [1, 1]} : vector<3x4xf32> to vector<3x1xf32>
    %c0_2 = arith.constant 0 : index
    %c0_3 = arith.constant 0 : index
    %c0_4 = arith.constant 0 : index
    %4 = vector.load %arg2[%c0_2, %c0_3, %c0_4] : memref<1x3x64xf32, #tpu.memory_space<vmem>>, vector<1x3x64xf32>
    %5 = vector.shape_cast %4 : vector<1x3x64xf32> to vector<3x64xf32>
    %cst = arith.constant dense<0.000000e+00> : vector<3x64xf32>
    %6 = tpu.matmul %2, %5, %cst {dimension_numbers = #tpu.dot_dimension_numbers<[1], [0], [0], [1], [0, 0, 1, 1], [], []>} : vector<3x3xf32>, vector<3x64xf32>, vector<3x64xf32> -> vector<3x64xf32>
    %7 = vector.broadcast %3 : vector<3x1xf32> to vector<3x64xf32>
    %8 = arith.addf %6, %7 : vector<3x64xf32>
    %c0_5 = arith.constant 0 : index
    %c0_6 = arith.constant 0 : index
    %c0_7 = arith.constant 0 : index
    %9 = vector.load %arg3[%c0_5, %c0_6, %c0_7] : memref<1x3x64xf32, #tpu.memory_space<vmem>>, vector<1x3x64xf32>
    %10 = vector.shape_cast %9 : vector<1x3x64xf32> to vector<3x64xf32>
    %11 = vector.shape_cast %8 : vector<3x64xf32> to vector<1x3x64xf32>
    tpu.vector_store %arg3[%c0_5, %c0_6, %c0_7], %11 {strides = array<i32>} : memref<1x3x64xf32, #tpu.memory_space<vmem>>, vector<1x3x64xf32>,
    %cst_8 = arith.constant dense<0.000000e+00> : vector<3x64xf32>
    %12 = tpu.matmul %2, %8, %cst_8 {dimension_numbers = #tpu.dot_dimension_numbers<[1], [0], [0], [1], [0, 0, 1, 1], [], []>} : vector<3x3xf32>, vector<3x64xf32>, vector<3x64xf32> -> vector<3x64xf32>
    %13 = vector.broadcast %3 : vector<3x1xf32> to vector<3x64xf32>
    %14 = arith.addf %12, %13 : vector<3x64xf32>
    %c0_9 = arith.constant 0 : index
    %c0_10 = arith.constant 0 : index
    %c0_11 = arith.constant 0 : index
    %15 = vector.load %arg4[%c0_9, %c0_10, %c0_11] : memref<1x3x64xf32, #tpu.memory_space<vmem>>, vector<1x3x64xf32>
    %16 = vector.shape_cast %15 : vector<1x3x64xf32> to vector<3x64xf32>
    %17 = vector.shape_cast %14 : vector<3x64xf32> to vector<1x3x64xf32>
    tpu.vector_store %arg4[%c0_9, %c0_10, %c0_11], %17 {strides = array<i32>} : memref<1x3x64xf32, #tpu.memory_space<vmem>>, vector<1x3x64xf32>,
    return
  }
  func.func @transform_0(%arg0: i32) -> (i32, i32, i32) {
    %c0_i32 = arith.constant 0 : i32
    %c0_i32_0 = arith.constant 0 : i32
    %c0_i32_1 = arith.constant 0 : i32
    return %arg0, %c0_i32, %c0_i32_0 : i32, i32, i32
  }
  func.func @transform_1(%arg0: i32) -> (i32, i32, i32) {
    %c0_i32 = arith.constant 0 : i32
    %c0_i32_0 = arith.constant 0 : i32
    %c0_i32_1 = arith.constant 0 : i32
    return %arg0, %c0_i32, %c0_i32_0 : i32, i32, i32
  }
  func.func @transform_2(%arg0: i32) -> (i32, i32, i32) {
    %c0_i32 = arith.constant 0 : i32
    %c0_i32_0 = arith.constant 0 : i32
    %c0_i32_1 = arith.constant 0 : i32
    return %arg0, %c0_i32, %c0_i32_0 : i32, i32, i32
  }
  func.func @transform_3(%arg0: i32) -> (i32, i32, i32) {
    %c0_i32 = arith.constant 0 : i32
    %c0_i32_0 = arith.constant 0 : i32
    %c0_i32_1 = arith.constant 0 : i32
    return %arg0, %c0_i32, %c0_i32_0 : i32, i32, i32
  }
}

</mosaic_0001>

<bundles_post_ra>
// kernel: tpu_custom_call.1
= control target key start
LH: loop header
LB: loop body
LE: loop exit
PB: predicated region body
PF: predicated region fallthrough
CT: control target
= control target key end

     0   :  { %s522_s12 = smov 0   ;;  %s547_s0 = inlined_call_operand.vmem [shape: f32[2,3,4], index: 0, kind: input, shape index: {}]   ;;  %s548_s1 = inlined_call_operand.vmem [shape: f32[2,3,64], index: 1, kind: input, shape index: {}]   ;;  %s549_s2 = inlined_call_operand.vmem [shape: f32[2,3,64], index: 2, kind: output, shape index: {0}]   ;;  %s550_s3 = inlined_call_operand.vmem [shape: f32[2,3,64], index: 3, kind: output, shape index: {1}]  }
   0x1 LB: > { %s450_s13 = sadd.s32 4294967295, %s497_s12   ;;  %p454_p0 = scmp.ge.s32.totalorder %s497_s12, 1  ;;  %s497_s12 = sphi %s522_s12, %s14_s12  }
   0x2   : > { %p148_p1 = scmp.lt.s32.totalorder %s497_s12, 3 }
   0x4   : > { %p149_p2 = pnand %p454_p0, %p148_p1 }
   0x5   : > { %p178_p3 = scmp.lt.s32.totalorder (!%p149_p2), %s450_s13, 1  ;;  %v499_v0 = vmov (!%p149_p2), 0.0   ;;  %vm500_vm0 = vmmov (!%p149_p2), 0   ;;  %v501_v1 = vmov (!%p149_p2), 3   ;;  %vm204_vm1 = vcmask (!%p149_p2), 1042432  }
   0x6   : > { %152 = sbr.rel (%p149_p2) target bundleno = 448 (0x1c0), region = 28  ;;  %469 = vmatprep.subr.mxu0 (!%p149_p2), %v499_v0  ;;  %471 = vmatprep.mubr.msk.f32.mxu0 (!%p149_p2), %vm500_vm0, %v499_v0  ;;  %vm201_vm2 = vcmask (!%p149_p2), 23552   ;;  %vm278_vm3 = vcmask (!%p149_p2), 518144  }
   0x7   : > { %490 = vset.pattern.permute.xlu0 (!%p149_p2), %v501_v1  ;;  %474 = vmatprep.subr.mxu1 (!%p149_p2), %v499_v0 }
   0x8   : > { %476 = vmatprep.mubr.msk.f32.mxu1 (!%p149_p2), %vm500_vm0, %v499_v0 }
   0xd   : > { %s552_s13 = smov (!%p178_p3, %s450_s13), 1 }
   0xe   : > { %s455_s14 = sshll.u32 %s552_s13, 2 }
   0xf   : > { %s185_s17 = scalar_lea.vmem %s548_s1, %s455_s14  ;;  %s181_s20 = scalar_lea.vmem %s547_s0, %s455_s14 }
  0x10   : > { %v195_v2 = vld [vmem:[%s185_s17] sm:$0x7]  ;;  %s189_s23 = scalar_lea.vmem %s549_s2, %s455_s14  ;;  %s193_s26 = scalar_lea.vmem %s550_s3, %s455_s14 }
  0x11   : > { %v194_v3 = vld [vmem:[%s181_s20] sm:$0x7]  ;;  %470 = vmatpush3.msk.msra.mxu0 %vm204_vm1, %v195_v2 }
  0x12   : > { %198 = vperm.xlu0 %490, %v194_v3   ;;  %472 = vmatmul.mubr.msk.f32.vlgmr.msra.gmra.mrb[0].mxu0 %vm201_vm2, %v194_v3 }
  0x91   : > { %v199_v4 = vpop.permute.xlu0 %198 }
  0xe5   : > { %v274_v5 = vpop.f32.mrb[0].mxu0 }
  0xe6   : > { %v275_v6 = vadd.f32 %v274_v5, %v199_v4  ;;  %v473_v7 = vpop.f32.mrb[1].mxu0 }
  0xe8   : > { %279 = vst.msk [vmem:[%s189_s23] sm:$0x7] %vm278_vm3, %v275_v6  ;;  %475 = vmatpush3.msk.msra.mxu1 %vm204_vm1, %v275_v6 }
  0xe9   : > { %477 = vmatmul.mubr.msk.f32.vlgmr.msra.gmra.mrb[0].mxu1 %vm201_vm2, %v194_v3 }
 0x1bc   : > { %v349_v8 = vpop.f32.mrb[0].mxu1 }
 0x1bd   : > { %v350_v9 = vadd.f32 %v349_v8, %v199_v4  ;;  %v478_v10 = vpop.f32.mrb[1].mxu1 }
 0x1bf   : > { %353 = vst.msk [vmem:[%s193_s26] sm:$0x7] %vm278_vm3, %v350_v9 }
 0x1c0 PF: > { %s14_s12 = sadd.s32 1, %s497_s12  }
 0x1c1   : > { %p11_p4 = scmp.ge.s32.totalorder %s14_s12, 4  }
 0x1c3   :  { %13 = sbr.rel (!%p11_p4) target bundleno = 1 (0x1), region = 73 }

</bundles_post_ra>
